<compile_context>
chip_gen: v7x
topology: tpu7x:2x2x1
jax: 0.10.0
libtpu: 0.0.40
codegen_flags: <defaults>
</compile_context>

<pallas_src>
import jax
import jax.numpy as jnp
from jax.experimental import pallas as pl
from jax.experimental.pallas import tpu as pltpu


def _round_up(x, m):
    return ((x + m - 1) // m) * m


# ------------------ tiled matmul + bias (bf16 in/out, f32 acc) ------------------

def _mm_bias_kernel(a_ref, b_ref, bias_ref, o_ref, acc_ref):
    @pl.when(pl.program_id(2) == 0)
    def _():
        acc_ref[...] = jnp.zeros_like(acc_ref)

    acc_ref[...] += jnp.dot(a_ref[...], b_ref[...],
                            preferred_element_type=jnp.float32)

    @pl.when(pl.program_id(2) == pl.num_programs(2) - 1)
    def _():
        o_ref[...] = (acc_ref[...] + bias_ref[...]).astype(o_ref.dtype)


def matmul_bias(a, b, bias, *, tm=256, tn=512, tk=1024, out_dtype=jnp.bfloat16):
    """out = a @ b + bias (bias broadcast over rows), bf16 operands & output.

    f32 accumulation in a VMEM scratch; tiled over (M, N) with K innermost
    ("arbitrary"); M/N grid axes are "parallel".  Operands are cast to bf16
    *before* padding so no extra f32 weight copy is materialized.
    """
    M, K = a.shape
    K2, N = b.shape
    assert K == K2
    tm = min(tm, _round_up(M, 16))     # bf16 (16, 128) sublane tile
    tn = min(tn, _round_up(N, 128))
    tk = min(tk, _round_up(K, 128))
    Mp, Np, Kp = _round_up(M, tm), _round_up(N, tn), _round_up(K, tk)

    a_p = jnp.pad(a.astype(jnp.bfloat16), ((0, Mp - M), (0, Kp - K)))
    b_p = jnp.pad(b.astype(jnp.bfloat16), ((0, Kp - K), (0, Np - N)))
    bias_p = jnp.pad(bias.astype(jnp.float32), (0, Np - N)).reshape(1, Np)

    grid = (Mp // tm, Np // tn, Kp // tk)
    out = pl.pallas_call(
        _mm_bias_kernel,
        out_shape=jax.ShapeDtypeStruct((Mp, Np), out_dtype),
        grid_spec=pltpu.PrefetchScalarGridSpec(
            num_scalar_prefetch=0,
            grid=grid,
            in_specs=[
                pl.BlockSpec((tm, tk), lambda i, j, k: (i, k)),
                pl.BlockSpec((tk, tn), lambda i, j, k: (k, j)),
                pl.BlockSpec((1, tn), lambda i, j, k: (0, j)),
            ],
            out_specs=pl.BlockSpec((tm, tn), lambda i, j, k: (i, j)),
            scratch_shapes=[pltpu.VMEM((tm, tn), jnp.float32)],
        ),
        compiler_params=pltpu.CompilerParams(
            dimension_semantics=("parallel", "parallel", "arbitrary")),
    )(a_p, b_p, bias_p)
    return out[:M, :N]


# ------------- pooled-query attention fused with the c-projection -------------

def _attn_cproj_kernel(q_ref, k_ref, v_ref, cw_ref, cb_ref, o_ref):
    # q_ref:  (H, tb, 1, hd)  bf16 (query scale already folded into weights)
    # k_ref:  (H, tb, L, hd)  bf16
    # v_ref:  (H, tb, L, hd)  bf16
    # cw_ref: (E, n_pad)      bf16 (resident across grid steps)
    # cb_ref: (1, n_pad)      f32  (resident)
    # o_ref:  (tb, n_pad)     f32
    num_heads, tb, _, hd = q_ref.shape
    seq = k_ref.shape[2]
    g = num_heads * tb

    # (H, tb, ...) -> (H*tb, ...) merges leading dims only (no relayout).
    q = q_ref[...].reshape(g, 1, hd)
    k = k_ref[...].reshape(g, seq, hd)
    v = v_ref[...].reshape(g, seq, hd)

    # Scores on the MXU: one query row per (head, batch) element, f32 accum.
    s = jnp.einsum('gqd,gkd->gqk', q, k,
                   preferred_element_type=jnp.float32)          # (g, 1, seq)

    # Numerically-stable softmax; only the statistics live in f32.
    s = s - jnp.max(s, axis=-1, keepdims=True)
    p = jnp.exp(s)
    p = p * pl.reciprocal(jnp.sum(p, axis=-1, keepdims=True), approx=True)

    # Softmax-weighted value sum on the MXU.
    o = jnp.einsum('gqk,gkd->gqd', p.astype(v.dtype), v,
                   preferred_element_type=jnp.float32)          # (g, 1, hd)
    o = o[:, 0, :]                                              # (g, hd)

    # Head-major g => per-head rows are contiguous static slices; merge the
    # heads along the lane axis to rebuild the (tb, E) embedding rows.
    o_flat = jnp.concatenate(
        [o[h * tb:(h + 1) * tb, :] for h in range(num_heads)], axis=-1)

    # Single output-projection dot: K = E accumulated inside the MXU,
    # lane-dense 128-wide output (no masked stores).
    o_ref[...] = (jnp.dot(o_flat.astype(jnp.bfloat16), cw_ref[...],
                          preferred_element_type=jnp.float32)
                  + cb_ref[...])


def _pick_batch_block(batch, num_heads, seq, hd):
    """Rows of the batch per attention grid step; keeps k+v blocks ~<= 4 MiB."""
    if batch % 8:
        return batch                       # single block (block dim == array dim)
    per_row = num_heads * seq * hd * 2 * 2           # bf16 k + v bytes per batch row
    tb = max(8, min(batch, (4 << 20) // max(per_row, 1)))
    tb -= tb % 8
    while batch % tb:
        tb -= 8
    return tb


# ------------------------------ forward (JAX glue) ---------------------------

def attention_pool_forward(x, params, num_heads):
    B, C, Hs, Ws = x.shape
    E = C
    assert E % num_heads == 0
    hd = E // num_heads

    # TODO(synk): token reshuffle / mean-token concat / pos-emb add are
    # plain-JAX data movement only.
    xs = x.reshape(B, C, Hs * Ws).transpose(2, 0, 1)                     # (HW, B, E)
    xs = jnp.concatenate([xs.mean(axis=0, keepdims=True), xs], axis=0)   # (L, B, E)
    xs = xs + params['pos_emb'][:, None, :]
    L = xs.shape[0]

    scale = hd ** -0.5

    # Fused k/v projection over ALL tokens (q of non-pooled tokens is unused).
    w_kv = jnp.concatenate([params['k_w'].T.astype(jnp.bfloat16),
                            params['v_w'].T.astype(jnp.bfloat16)], axis=1)  # (E, 2E)
    b_kv = jnp.concatenate([params['k_b'], params['v_b']])                  # (2E,)
    kv = matmul_bias(xs.reshape(L * B, E), w_kv, b_kv)                      # (L*B, 2E) bf16

    # q projection for the pooled token only; head scaling folded into weights.
    w_q = (params['q_w'].T * scale).astype(jnp.bfloat16)                    # (E, E)
    b_q = params['q_b'] * scale
    q0 = matmul_bias(xs[0], w_q, b_q)                                       # (B, E) bf16

    # Head-major (h, b) layouts so per-head lane blocks are contiguous slices.
    # TODO(synk): these transposes are plain-JAX data movement (bf16).
    kh = kv[:, :E].reshape(L, B, num_heads, hd).transpose(2, 1, 0, 3)       # (H, B, L, hd)
    vh = kv[:, E:].reshape(L, B, num_heads, hd).transpose(2, 1, 0, 3)       # (H, B, L, hd)
    qh = q0.reshape(B, num_heads, hd).transpose(1, 0, 2)[:, :, None, :]     # (H, B, 1, hd)

    out_dim = params['c_b'].shape[0]
    n_pad = _round_up(out_dim, 128)          # lane-dense output inside the kernel
    cw = jnp.pad(params['c_w'].T.astype(jnp.bfloat16),
                 ((0, 0), (0, n_pad - out_dim)))                            # (E, n_pad)
    cb = jnp.pad(params['c_b'].astype(jnp.float32),
                 (0, n_pad - out_dim)).reshape(1, n_pad)

    tb = _pick_batch_block(B, num_heads, L, hd)
    pooled = pl.pallas_call(
        _attn_cproj_kernel,
        out_shape=jax.ShapeDtypeStruct((B, n_pad), jnp.float32),
        grid_spec=pltpu.PrefetchScalarGridSpec(
            num_scalar_prefetch=0,
            grid=(B // tb,),
            in_specs=[
                pl.BlockSpec((num_heads, tb, 1, hd), lambda i: (0, i, 0, 0)),
                pl.BlockSpec((num_heads, tb, L, hd), lambda i: (0, i, 0, 0)),
                pl.BlockSpec((num_heads, tb, L, hd), lambda i: (0, i, 0, 0)),
                pl.BlockSpec((E, n_pad), lambda i: (0, 0)),   # resident weights
                pl.BlockSpec((1, n_pad), lambda i: (0, 0)),   # resident bias
            ],
            out_specs=pl.BlockSpec((tb, n_pad), lambda i: (i, 0)),
        ),
        compiler_params=pltpu.CompilerParams(
            dimension_semantics=("parallel",)),
    )(qh, kh, vh, cw, cb)
    return pooled[:, :out_dim]                                              # (B, out_dim)


# ------------------------- pure-JAX reference (f32) --------------------------

def attention_pool_reference(x, p, num_heads):
    B, C, H, W = x.shape
    E = C
    hd = E // num_heads
    xs = x.reshape(B, C, H * W).transpose(2, 0, 1)
    xs = jnp.concatenate([xs.mean(axis=0, keepdims=True), xs], axis=0)
    xs = xs + p['pos_emb'][:, None, :]
    L = xs.shape[0]
    q = (xs @ p['q_w'].T + p['q_b']) * (hd ** -0.5)
    k = xs @ p['k_w'].T + p['k_b']
    v = xs @ p['v_w'].T + p['v_b']
    qh = q.reshape(L, B * num_heads, hd).transpose(1, 0, 2)
    kh = k.reshape(L, B * num_heads, hd).transpose(1, 0, 2)
    vh = v.reshape(L, B * num_heads, hd).transpose(1, 0, 2)
    s = jnp.einsum('bqd,bkd->bqk', qh, kh)
    a = jax.nn.softmax(s, axis=-1)
    o = jnp.einsum('bqk,bkd->bqd', a, vh)
    o = o.transpose(1, 0, 2).reshape(L, B, E)
    out = o @ p['c_w'].T + p['c_b']
    return out[0]


# --------------------------- deterministic params ----------------------------

def init_attention_pool(key, spacial_dim, embed_dim, num_heads, output_dim):
    ks = jax.random.split(key, 9)
    s = 1.0 / (embed_dim ** 0.5)
    return {
        'pos_emb': jax.random.normal(ks[0], (spacial_dim ** 2 + 1, embed_dim),
                                     jnp.float32) * s,
        'q_w': jax.random.normal(ks[1], (embed_dim, embed_dim), jnp.float32) * s,
        'q_b': jax.random.normal(ks[2], (embed_dim,), jnp.float32) * s,
        'k_w': jax.random.normal(ks[3], (embed_dim, embed_dim), jnp.float32) * s,
        'k_b': jax.random.normal(ks[4], (embed_dim,), jnp.float32) * s,
        'v_w': jax.random.normal(ks[5], (embed_dim, embed_dim), jnp.float32) * s,
        'v_b': jax.random.normal(ks[6], (embed_dim,), jnp.float32) * s,
        'c_w': jax.random.normal(ks[7], (output_dim, embed_dim), jnp.float32) * s,
        'c_b': jax.random.normal(ks[8], (output_dim,), jnp.float32) * s,
    }


if __name__ == "__main__":
    key = jax.random.PRNGKey(0)
    k_param, k_x = jax.random.split(key)

    batch = 2
    spacial_dim = 4          # -> L = 17 tokens
    embed_dim = 256
    num_heads = 4            # -> head_dim = 64
    output_dim = 32

    params = init_attention_pool(k_param, spacial_dim, embed_dim, num_heads,
                                 output_dim)
    x = jax.random.normal(k_x, (batch, embed_dim, spacial_dim, spacial_dim),
                          jnp.float32)

    out = attention_pool_forward(x, params, num_heads)
    out = jax.block_until_ready(out)

    assert out.shape == (batch, output_dim), out.shape
    assert bool(jnp.all(jnp.isfinite(out)))

    ref = attention_pool_reference(x, params, num_heads)
    rel = jnp.linalg.norm(out - ref) / (jnp.linalg.norm(ref) + 1e-6)
    assert float(rel) < 0.08, f"relative error too large: {float(rel)}"
    print("KERNEL_OK")
</pallas_src>

<mosaic_0001>
module attributes {stable_mosaic.version = 11 : i64} {
  func.func @_mm_bias_kernel(%arg0: i32, %arg1: i32, %arg2: i32, %arg3: memref<48x256xbf16, #tpu.memory_space<vmem>>, %arg4: memref<256x512xbf16, #tpu.memory_space<vmem>>, %arg5: memref<1x512xf32, #tpu.memory_space<vmem>>, %arg6: memref<48x512xbf16, #tpu.memory_space<vmem>>, %arg7: memref<48x512xf32, #tpu.memory_space<vmem>>) attributes {dimension_semantics = [#tpu.dimension_semantics<parallel>, #tpu.dimension_semantics<parallel>, #tpu.dimension_semantics<arbitrary>], iteration_bounds = array<i64: 1, 1, 1>, scalar_prefetch = 0 : i64, scratch_operands = 1 : i64, tpu.core_type = #tpu.core_type<tc>, window_params = [{transform_indices = @transform_0, window_bounds = array<i64: 48, 256>}, {transform_indices = @transform_1, window_bounds = array<i64: 256, 512>}, {transform_indices = @transform_2, window_bounds = array<i64: 1, 512>}, {transform_indices = @transform_3, window_bounds = array<i64: 48, 512>}]} {
    %c0_i32 = arith.constant 0 : i32
    %0 = arith.cmpi eq, %arg2, %c0_i32 : i32
    %1 = arith.extui %0 : i1 to i32
    %c0_i32_0 = arith.constant 0 : i32
    %2 = arith.cmpi ne, %1, %c0_i32_0 : i32
    scf.if %2 {
      %cst_10 = arith.constant 0.000000e+00 : f32
      %12 = vector.broadcast %cst_10 : f32 to vector<48x512xf32>
      %c0_11 = arith.constant 0 : index
      %c0_12 = arith.constant 0 : index
      %13 = vector.load %arg7[%c0_11, %c0_12] : memref<48x512xf32, #tpu.memory_space<vmem>>, vector<48x512xf32>
      tpu.vector_store %arg7[%c0_11, %c0_12], %12 {strides = array<i32>} : memref<48x512xf32, #tpu.memory_space<vmem>>, vector<48x512xf32>,
    } else {
    }
    %c0 = arith.constant 0 : index
    %c0_1 = arith.constant 0 : index
    %3 = vector.load %arg7[%c0, %c0_1] : memref<48x512xf32, #tpu.memory_space<vmem>>, vector<48x512xf32>
    %c0_2 = arith.constant 0 : index
    %c0_3 = arith.constant 0 : index
    %4 = vector.load %arg3[%c0_2, %c0_3] : memref<48x256xbf16, #tpu.memory_space<vmem>>, vector<48x256xbf16>
    %c0_4 = arith.constant 0 : index
    %c0_5 = arith.constant 0 : index
    %5 = vector.load %arg4[%c0_4, %c0_5] : memref<256x512xbf16, #tpu.memory_space<vmem>>, vector<256x512xbf16>
    %cst = arith.constant dense<0.000000e+00> : vector<48x512xf32>
    %6 = tpu.matmul %4, %5, %cst {dimension_numbers = #tpu.dot_dimension_numbers<[1], [0], [0], [1], [0, 0, 1, 1], [], []>} : vector<48x256xbf16>, vector<256x512xbf16>, vector<48x512xf32> -> vector<48x512xf32>
    %7 = arith.addf %3, %6 : vector<48x512xf32>
    %c0_6 = arith.constant 0 : index
    %c0_7 = arith.constant 0 : index
    %8 = vector.load %arg7[%c0_6, %c0_7] : memref<48x512xf32, #tpu.memory_space<vmem>>, vector<48x512xf32>
    tpu.vector_store %arg7[%c0_6, %c0_7], %7 {strides = array<i32>} : memref<48x512xf32, #tpu.memory_space<vmem>>, vector<48x512xf32>,
    %c0_i32_8 = arith.constant 0 : i32
    %9 = arith.cmpi eq, %arg2, %c0_i32_8 : i32
    %10 = arith.extui %9 : i1 to i32
    %c0_i32_9 = arith.constant 0 : i32
    %11 = arith.cmpi ne, %10, %c0_i32_9 : i32
    scf.if %11 {
      %c0_10 = arith.constant 0 : index
      %c0_11 = arith.constant 0 : index
      %12 = vector.load %arg7[%c0_10, %c0_11] : memref<48x512xf32, #tpu.memory_space<vmem>>, vector<48x512xf32>
      %c0_12 = arith.constant 0 : index
      %c0_13 = arith.constant 0 : index
      %13 = vector.load %arg5[%c0_12, %c0_13] : memref<1x512xf32, #tpu.memory_space<vmem>>, vector<1x512xf32>
      %14 = vector.broadcast %13 : vector<1x512xf32> to vector<48x512xf32>
      %15 = arith.addf %12, %14 : vector<48x512xf32>
      %16 = arith.truncf %15 : vector<48x512xf32> to vector<48x512xbf16>
      %c0_14 = arith.constant 0 : index
      %c0_15 = arith.constant 0 : index
      %17 = vector.load %arg6[%c0_14, %c0_15] : memref<48x512xbf16, #tpu.memory_space<vmem>>, vector<48x512xbf16>
      tpu.vector_store %arg6[%c0_14, %c0_15], %16 {strides = array<i32>} : memref<48x512xbf16, #tpu.memory_space<vmem>>, vector<48x512xbf16>,
    } else {
    }
    return
  }
  func.func @transform_0(%arg0: i32, %arg1: i32, %arg2: i32) -> (i32, i32) {
    %c0_i32 = arith.constant 0 : i32
    return %arg0, %arg2 : i32, i32
  }
  func.func @transform_1(%arg0: i32, %arg1: i32, %arg2: i32) -> (i32, i32) {
    %c0_i32 = arith.constant 0 : i32
    return %arg2, %arg1 : i32, i32
  }
  func.func @transform_2(%arg0: i32, %arg1: i32, %arg2: i32) -> (i32, i32) {
    %c0_i32 = arith.constant 0 : i32
    %c0_i32_0 = arith.constant 0 : i32
    return %c0_i32, %arg1 : i32, i32
  }
  func.func @transform_3(%arg0: i32, %arg1: i32, %arg2: i32) -> (i32, i32) {
    %c0_i32 = arith.constant 0 : i32
    return %arg0, %arg1 : i32, i32
  }
}

</mosaic_0001>

<bundles_post_ra>
// kernel: tpu_custom_call.1
= control target key start
LH: loop header
LB: loop body
LE: loop exit
PB: predicated region body
PF: predicated region fallthrough
CT: control target
= control target key end

     0   :  { %8 = vsyncpa [#allocation4], 0  ;;  %s1230_s0 = inlined_call_operand.hbm [shape: bf16[48,256], index: 0, kind: input, shape index: {}]   ;;  %s1231_s1 = inlined_call_operand.hbm [shape: bf16[256,512], index: 1, kind: input, shape index: {}]   ;;  %s1232_s2 = inlined_call_operand.vmem [shape: f32[1,512], index: 2, kind: input, shape index: {}]   ;;  %s1233_s3 = inlined_call_operand.hbm [shape: bf16[48,512], index: 3, kind: output, shape index: {}]  }
   0x1   :  { %9 = vsyncpa [#allocation7], 0 }
   0x2   :  { %10 = vsyncpa [#allocation5], 0  ;;  %s1142_s12 = smov [#allocation3]   ;;  %s1070_s16 = scalar_lea.hbm %s1230_s0, 768 }
   0x3   :  { %s16_s13 = sshll.u32 %s1142_s12, 4  ;;  %p1071_p0 = scmp.ne.s32.totalorder %s1230_s0, %s1070_s16  ;;  %s17_s13 = int_to_ptr.vmem [resolvable:$true] %s16_s13 }
   0x4   :  { %p1074_p1 = scmp.lt.u32.totalorder %s1070_s16, %s1230_s0 }
   0x6   :  { %p1076_p2 = pnand %p1074_p1, %p1071_p0 }
   0x8   :  { %1079 = shalt.err (!%p1076_p2)
}
   0x9   :  { %s1080_s21 = scalar_lea.vmem %s17_s13, 768  ;;  %p1085_p4 = scmp.lt.s32.totalorder %s17_s13, %s17_s13 }
   0xa   :  { %p1081_p3 = scmp.ne.s32.totalorder %s17_s13, %s1080_s21  ;;  %p1086_p5 = scmp.lt.s32.totalorder %s1080_s21, %s1080_s21 }
   0xc   :  { %p1087_p6 = por %p1086_p5, %p1085_p4 }
   0xe   :  { %p1088_p7 = pnand %p1087_p6, %p1081_p3 }
  0x10   :  { %1091 = shalt.err (!%p1088_p7)
}
  0x11   :  { %s1143_s22 = smov 128   ;;  %s1144_s23 = smov 8  }
  0x12   :  { %22 = dma.hbm_to_vmem [thread:$0]  %s1230_s0, 768, %s17_s13, [#allocation4], %s1143_s22, %s1143_s22, %s1144_s23  }
  0x13   :  { %s1145_s26 = smov [#allocation6]   ;;  %s1092_s30 = scalar_lea.hbm %s1231_s1, 8192 }
  0x14   :  { %s28_s27 = sshll.u32 %s1145_s26, 4  ;;  %p1093_p8 = scmp.ne.s32.totalorder %s1231_s1, %s1092_s30  ;;  %s29_s27 = int_to_ptr.vmem [resolvable:$true] %s28_s27 }
  0x15   :  { %p1096_p9 = scmp.lt.u32.totalorder %s1092_s30, %s1231_s1 }
  0x17   :  { %p1098_p10 = pnand %p1096_p9, %p1093_p8 }
  0x19   :  { %1101 = shalt.err (!%p1098_p10)
}
  0x1a   :  { %s1102_s8 = scalar_lea.vmem %s29_s27, 8192  ;;  %p1107_p12 = scmp.lt.s32.totalorder %s29_s27, %s29_s27 }
  0x1b   :  { %p1103_p11 = scmp.ne.s32.totalorder %s29_s27, %s1102_s8  ;;  %p1108_p13 = scmp.lt.s32.totalorder %s1102_s8, %s1102_s8 }
  0x1d   :  { %p1109_p0 = por %p1108_p13, %p1107_p12 }
  0x1f   :  { %p1110_p1 = pnand %p1109_p0, %p1103_p11 }
  0x21   :  { %1113 = shalt.err (!%p1110_p1)
}
  0x22   :  { %s1146_s0 = smov 256   ;;  %s1147_s9 = smov 16  }
  0x23   :  { %34 = dma.hbm_to_vmem [thread:$0]  %s1231_s1, 8192, %s29_s27, [#allocation7], %s1146_s0, %s1146_s0, %s1147_s9  }
  0x24   :  { %1136 = dma.done.wait [#allocation4], 768  }
  0x25   :  { %1137 = vsyncadd [#allocation4], 4294966528 }
  0x26   :  { %1138 = dma.done.wait [#allocation7], 8192  }
  0x27   :  { %1139 = vsyncadd [#allocation7], 4294959104  ;;  %v965_v0 = vld [vmem:[#allocation6 + $0x4] ss:$16 sps:$4 sm:$0xff]   ;;  %v967_v1 = vld [vmem:[#allocation6 + $0xc] ss:$16 sps:$4 sm:$0xff]  }
  0x28   :  { %515 = vmatprep.subr.bf16.mxu0 %v965_v0  ;;  %v969_v2 = vld [vmem:[#allocation6] ss:$16 sps:$4 sm:$0xff]   ;;  %v970_v3 = vld [vmem:[#allocation6 + $0x8] ss:$16 sps:$4 sm:$0xff]   ;;  %578 = vmatprep.subr.bf16.mxu1 %v967_v1  ;;  %v971_v4 = vld [vmem:[#allocation6 + $0x24] ss:$16 sps:$4 sm:$0xff]  }
  0x29   :  { %516 = vmatpush1.bf16.msra.mxu0 %v969_v2  ;;  %579 = vmatpush1.bf16.msra.mxu1 %v970_v3  ;;  %v973_v5 = vld [vmem:[#allocation6 + $0x2c] ss:$16 sps:$4 sm:$0xff]   ;;  %v975_v6 = vld [vmem:[#allocation6 + $0x20] ss:$16 sps:$4 sm:$0xff]   ;;  %v976_v7 = vld [vmem:[#allocation6 + $0x28] ss:$16 sps:$4 sm:$0xff]  }
  0x2a   :  { %517 = vmatprep.subr.bf16.mxu0 %v971_v4  ;;  %580 = vmatprep.subr.bf16.mxu1 %v973_v5  ;;  %v977_v8 = vld [vmem:[#allocation6 + $0x44] ss:$16 sps:$4 sm:$0xff]   ;;  %v979_v9 = vld [vmem:[#allocation6 + $0x4c] ss:$16 sps:$4 sm:$0xff]   ;;  %v981_v10 = vld [vmem:[#allocation6 + $0x40] ss:$16 sps:$4 sm:$0xff]  }
  0x2b   :  { %v982_v11 = vld [vmem:[#allocation6 + $0x48] ss:$16 sps:$4 sm:$0xff]   ;;  %v983_v12 = vld [vmem:[#allocation6 + $0x64] ss:$16 sps:$4 sm:$0xff]   ;;  %v985_v13 = vld [vmem:[#allocation6 + $0x6c] ss:$16 sps:$4 sm:$0xff]  }
  0x2c   :  { %v987_v14 = vld [vmem:[#allocation6 + $0x60] ss:$16 sps:$4 sm:$0xff]   ;;  %v988_v15 = vld [vmem:[#allocation6 + $0x68] ss:$16 sps:$4 sm:$0xff]   ;;  %v989_v16 = vld [vmem:[#allocation6 + $0x84] ss:$16 sps:$4 sm:$0xff]  }
  0x2d   :  { %518 = vmatpush1.bf16.msra.mxu0 %v975_v6  ;;  %581 = vmatpush1.bf16.msra.mxu1 %v976_v7  ;;  %v991_v17 = vld [vmem:[#allocation6 + $0x8c] ss:$16 sps:$4 sm:$0xff]   ;;  %v993_v18 = vld [vmem:[#allocation6 + $0x80] ss:$16 sps:$4 sm:$0xff]   ;;  %v994_v19 = vld [vmem:[#allocation6 + $0x88] ss:$16 sps:$4 sm:$0xff]   ;;  %v718_v6 = vlaneseq }
  0x2e   :  { %519 = vmatprep.subr.bf16.mxu0 %v977_v8  ;;  %582 = vmatprep.subr.bf16.mxu1 %v979_v9  ;;  %v995_v20 = vld [vmem:[#allocation6 + $0xa4] ss:$16 sps:$4 sm:$0xff]   ;;  %v997_v21 = vld [vmem:[#allocation6 + $0xac] ss:$16 sps:$4 sm:$0xff]   ;;  %v999_v22 = vld [vmem:[#allocation6 + $0xa0] ss:$16 sps:$4 sm:$0xff]  }
  0x2f   :  { %v1000_v23 = vld [vmem:[#allocation6 + $0xa8] ss:$16 sps:$4 sm:$0xff]   ;;  %v1001_v24 = vld [vmem:[#allocation6 + $0xc4] ss:$16 sps:$4 sm:$0xff]   ;;  %v1003_v25 = vld [vmem:[#allocation6 + $0xcc] ss:$16 sps:$4 sm:$0xff]  }
  0x30   :  { %v1005_v26 = vld [vmem:[#allocation6 + $0xc0] ss:$16 sps:$4 sm:$0xff]   ;;  %v1006_v27 = vld [vmem:[#allocation6 + $0xc8] ss:$16 sps:$4 sm:$0xff]   ;;  %v1007_v28 = vld [vmem:[#allocation6 + $0xe4] ss:$16 sps:$4 sm:$0xff]  }
  0x31   :  { %520 = vmatpush1.bf16.msra.mxu0 %v981_v10  ;;  %583 = vmatpush1.bf16.msra.mxu1 %v982_v11  ;;  %v1009_v29 = vld [vmem:[#allocation6 + $0xec] ss:$16 sps:$4 sm:$0xff]   ;;  %v1011_v30 = vld [vmem:[#allocation6 + $0xe0] ss:$16 sps:$4 sm:$0xff]   ;;  %v1012_v31 = vld [vmem:[#allocation6 + $0xe8] ss:$16 sps:$4 sm:$0xff]  }
  0x32   :  { %521 = vmatprep.subr.bf16.mxu0 %v983_v12  ;;  %584 = vmatprep.subr.bf16.mxu1 %v985_v13  ;;  %v1013_v32 = vld [vmem:[#allocation6 + $0x104] ss:$16 sps:$4 sm:$0xff]   ;;  %v1015_v33 = vld [vmem:[#allocation6 + $0x10c] ss:$16 sps:$4 sm:$0xff]   ;;  %v1017_v34 = vld [vmem:[#allocation6 + $0x100] ss:$16 sps:$4 sm:$0xff]  }
  0x33   :  { %v1018_v35 = vld [vmem:[#allocation6 + $0x108] ss:$16 sps:$4 sm:$0xff]   ;;  %v1019_v36 = vld [vmem:[#allocation6 + $0x124] ss:$16 sps:$4 sm:$0xff]   ;;  %v1021_v37 = vld [vmem:[#allocation6 + $0x12c] ss:$16 sps:$4 sm:$0xff]  }
  0x34   :  { %v1023_v38 = vld [vmem:[#allocation6 + $0x120] ss:$16 sps:$4 sm:$0xff]   ;;  %v1024_v39 = vld [vmem:[#allocation6 + $0x128] ss:$16 sps:$4 sm:$0xff]   ;;  %v1025_v40 = vld [vmem:[#allocation6 + $0x144] ss:$16 sps:$4 sm:$0xff]  }
  0x35   :  { %522 = vmatpush1.bf16.msra.mxu0 %v987_v14  ;;  %585 = vmatpush1.bf16.msra.mxu1 %v988_v15  ;;  %v1027_v41 = vld [vmem:[#allocation6 + $0x14c] ss:$16 sps:$4 sm:$0xff]   ;;  %v1029_v42 = vld [vmem:[#allocation6 + $0x140] ss:$16 sps:$4 sm:$0xff]   ;;  %v1030_v43 = vld [vmem:[#allocation6 + $0x148] ss:$16 sps:$4 sm:$0xff]  }
  0x36   :  { %523 = vmatprep.subr.bf16.mxu0 %v989_v16  ;;  %586 = vmatprep.subr.bf16.mxu1 %v991_v17  ;;  %v1031_v44 = vld [vmem:[#allocation6 + $0x164] ss:$16 sps:$4 sm:$0xff]   ;;  %v1033_v45 = vld [vmem:[#allocation6 + $0x16c] ss:$16 sps:$4 sm:$0xff]   ;;  %v1035_v46 = vld [vmem:[#allocation6 + $0x160] ss:$16 sps:$4 sm:$0xff]  }
  0x37   :  { %v1036_v47 = vld [vmem:[#allocation6 + $0x168] ss:$16 sps:$4 sm:$0xff]   ;;  %v1063_v48 = vld [vmem:[#allocation3 + $0x4] ss:$8 sps:$4 sm:$0xff]   ;;  %v1041_v51 = vld [vmem:[#allocation6 + $0x180] ss:$16 sps:$4 sm:$0xff]  }
  0x38   :  { %v1037_v49 = vld [vmem:[#allocation6 + $0x184] ss:$16 sps:$4 sm:$0xff]   ;;  %v1039_v50 = vld [vmem:[#allocation6 + $0x18c] ss:$16 sps:$4 sm:$0xff]   ;;  %547 = vmatprep.mubr.bf16.mxu0 %v1063_v48  ;;  %610 = vmatprep.mubr.bf16.mxu1 %v1063_v48  ;;  %v1042_v52 = vld [vmem:[#allocation6 + $0x188] ss:$16 sps:$4 sm:$0xff]  }
  0x39   :  { %524 = vmatpush1.bf16.msra.mxu0 %v993_v18  ;;  %587 = vmatpush1.bf16.msra.mxu1 %v994_v19  ;;  %v1043_v53 = vld [vmem:[#allocation6 + $0x1a4] ss:$16 sps:$4 sm:$0xff]   ;;  %v1045_v54 = vld [vmem:[#allocation6 + $0x1ac] ss:$16 sps:$4 sm:$0xff]   ;;  %v1047_v55 = vld [vmem:[#allocation6 + $0x1a0] ss:$16 sps:$4 sm:$0xff]  }
  0x3a   :  { %525 = vmatprep.subr.bf16.mxu0 %v995_v20  ;;  %588 = vmatprep.subr.bf16.mxu1 %v997_v21  ;;  %v1048_v56 = vld [vmem:[#allocation6 + $0x1a8] ss:$16 sps:$4 sm:$0xff]   ;;  %v1049_v57 = vld [vmem:[#allocation6 + $0x1c4] ss:$16 sps:$4 sm:$0xff]   ;;  %v1051_v58 = vld [vmem:[#allocation6 + $0x1cc] ss:$16 sps:$4 sm:$0xff]  }
  0x3b   :  { %v1053_v59 = vld [vmem:[#allocation6 + $0x1c0] ss:$16 sps:$4 sm:$0xff]   ;;  %v1054_v60 = vld [vmem:[#allocation6 + $0x1c8] ss:$16 sps:$4 sm:$0xff]   ;;  %v1055_v61 = vld [vmem:[#allocation6 + $0x1e4] ss:$16 sps:$4 sm:$0xff]  }
  0x3c   :  { %v1057_v62 = vld [vmem:[#allocation6 + $0x1ec] ss:$16 sps:$4 sm:$0xff]   ;;  %v1059_v63 = vld [vmem:[#allocation6 + $0x1e0] ss:$16 sps:$4 sm:$0xff]   ;;  %v1060_v0 = vld [vmem:[#allocation6 + $0x1e8] ss:$16 sps:$4 sm:$0xff]  }
  0x3d   :  { %526 = vmatpush1.bf16.msra.mxu0 %v999_v22  ;;  %589 = vmatpush1.bf16.msra.mxu1 %v1000_v23  ;;  %v1061_v1 = vld [vmem:[#allocation3] ss:$8 sps:$4 sm:$0xff]   ;;  %v1064_v2 = vld [vmem:[#allocation3 + $0x14] ss:$8 sps:$4 sm:$0xff]   ;;  %v1066_v3 = vld [vmem:[#allocation3 + $0x10] ss:$8 sps:$4 sm:$0xff]  }
  0x3e   :  { %527 = vmatprep.subr.bf16.mxu0 %v1001_v24  ;;  %590 = vmatprep.subr.bf16.mxu1 %v1003_v25  ;;  %v1067_v4 = vld [vmem:[#allocation3 + $0x24] ss:$8 sps:$4 sm:$0xff]   ;;  %v1069_v5 = vld [vmem:[#allocation3 + $0x20] ss:$8 sps:$4 sm:$0xff]   ;;  %v719_v7 = vshrl.u32 %v718_v6, 7 }
  0x3f   :  { %v716_v10 = vld [vmem:[%s1232_s2] sm:$0xf]  ;;  %s1148_s2 = smov [#allocation8]  }
  0x40   :  { %v720_v8 = vsub.s32 0, %v719_v7  ;;  %v728_v9 = vsub.s32 2, %v719_v7  ;;  %v724_v11 = vsub.s32 1, %v719_v7  ;;  %v732_v12 = vsub.s32 3, %v719_v7  ;;  %s851_s13 = sshll.u32 %s1148_s2, 4  ;;  %s852_s13 = int_to_ptr.vmem [resolvable:$true] %s851_s13 }
  0x41   :  { %528 = vmatpush1.bf16.msra.mxu0 %v1005_v26  ;;  %591 = vmatpush1.bf16.msra.mxu1 %v1006_v27  ;;  %s1114_s14 = scalar_lea.vmem %s852_s13, 1536  ;;  %p1119_p3 = scmp.lt.s32.totalorder %s852_s13, %s852_s13 }
  0x42   :  { %529 = vmatprep.subr.bf16.mxu0 %v1007_v28  ;;  %592 = vmatprep.subr.bf16.mxu1 %v1009_v29  ;;  %v721_v13 = vrot.slane %v716_v10, %v720_v8  ;;  %v729_v14 = vrot.slane %v716_v10, %v728_v9  ;;  %v1199_v15 = vrot.slane %v716_v10, %v724_v11  ;;  %p1115_p2 = scmp.ne.s32.totalorder %s852_s13, %s1114_s14  ;;  %p1120_p4 = scmp.lt.s32.totalorder %s1114_s14, %s1114_s14 }
  0x43   :  { %v1201_v16 = vrot.slane %v716_v10, %v732_v12 }
  0x44   :  { %p1121_p5 = por %p1120_p4, %p1119_p3 }
  0x45   :  { %530 = vmatpush1.bf16.msra.mxu0 %v1011_v30  ;;  %593 = vmatpush1.bf16.msra.mxu1 %v1012_v31 }
  0x46   :  { %531 = vmatprep.subr.bf16.mxu0 %v1013_v32  ;;  %594 = vmatprep.subr.bf16.mxu1 %v1015_v33  ;;  %p1122_p6 = pnand %p1121_p5, %p1115_p2 }
  0x49   :  { %532 = vmatpush1.bf16.msra.mxu0 %v1017_v34  ;;  %595 = vmatpush1.bf16.msra.mxu1 %v1018_v35 }
  0x4a   :  { %533 = vmatprep.subr.bf16.mxu0 %v1019_v36  ;;  %596 = vmatprep.subr.bf16.mxu1 %v1021_v37 }
  0x4d   :  { %534 = vmatpush1.bf16.msra.mxu0 %v1023_v38  ;;  %597 = vmatpush1.bf16.msra.mxu1 %v1024_v39 }
  0x4e   :  { %535 = vmatprep.subr.bf16.mxu0 %v1025_v40  ;;  %598 = vmatprep.subr.bf16.mxu1 %v1027_v41 }
  0x51   :  { %536 = vmatpush1.bf16.msra.mxu0 %v1029_v42  ;;  %599 = vmatpush1.bf16.msra.mxu1 %v1030_v43 }
  0x52   :  { %537 = vmatprep.subr.bf16.mxu0 %v1031_v44  ;;  %600 = vmatprep.subr.bf16.mxu1 %v1033_v45 }
  0x55   :  { %538 = vmatpush1.bf16.msra.mxu0 %v1035_v46  ;;  %601 = vmatpush1.bf16.msra.mxu1 %v1036_v47 }
  0x56   :  { %539 = vmatprep.subr.bf16.mxu0 %v1037_v49  ;;  %602 = vmatprep.subr.bf16.mxu1 %v1039_v50 }
  0x59   :  { %540 = vmatpush1.bf16.msra.mxu0 %v1041_v51  ;;  %603 = vmatpush1.bf16.msra.mxu1 %v1042_v52 }
  0x5a   :  { %541 = vmatprep.subr.bf16.mxu0 %v1043_v53  ;;  %604 = vmatprep.subr.bf16.mxu1 %v1045_v54 }
  0x5d   :  { %542 = vmatpush1.bf16.msra.mxu0 %v1047_v55  ;;  %605 = vmatpush1.bf16.msra.mxu1 %v1048_v56 }
  0x5e   :  { %543 = vmatprep.subr.bf16.mxu0 %v1049_v57  ;;  %606 = vmatprep.subr.bf16.mxu1 %v1051_v58 }
  0x61   :  { %544 = vmatpush1.bf16.msra.mxu0 %v1053_v59  ;;  %607 = vmatpush1.bf16.msra.mxu1 %v1054_v60 }
  0x62   :  { %545 = vmatprep.subr.bf16.mxu0 %v1055_v61  ;;  %608 = vmatprep.subr.bf16.mxu1 %v1057_v62 }
  0x65   :  { %546 = vmatpush1.bf16.msra.mxu0 %v1059_v63  ;;  %609 = vmatpush1.bf16.msra.mxu1 %v1060_v0 }
  0x68   :  { %548 = vmatmul.mubr.bf16.vlgmr.msra.gmra.mrb[0].mxu0 %v1061_v1  ;;  %611 = vmatmul.mubr.bf16.vlgmr.msra.gmra.mrb[0].mxu1 %v1061_v1 }
  0x69   :  { %557 = vmatprep.mubr.bf16.mxu0 %v1064_v2  ;;  %620 = vmatprep.mubr.bf16.mxu1 %v1064_v2 }
  0x70   :  { %558 = vmatmul.mubr.bf16.gmra.mrb[4].mxu0 %v1066_v3  ;;  %621 = vmatmul.mubr.bf16.gmra.mrb[4].mxu1 %v1066_v3 }
  0x71   :  { %567 = vmatprep.mubr.bf16.mxu0 %v1067_v4  ;;  %630 = vmatprep.mubr.bf16.mxu1 %v1067_v4 }
  0x78   :  { %568 = vmatmul.mubr.bf16.gmra.mrb[8].mxu0 %v1069_v5  ;;  %631 = vmatmul.mubr.bf16.gmra.mrb[8].mxu1 %v1069_v5 }
 0x13b   :  { %v549_v17 = vpop.f32.mrb[0].mxu0  ;;  %v612_v18 = vpop.f32.mrb[0].mxu1 }
 0x13c   :  { %v738_v19 = vadd.f32 %v721_v13, %v549_v17  ;;  %v740_v20 = vadd.f32 %v729_v14, %v612_v18  ;;  %v551_v21 = vpop.f32.mrb[1].mxu0  ;;  %v614_v22 = vpop.f32.mrb[1].mxu1 }
 0x13d   :  { %v739_v23 = vadd.f32 %v1199_v15, %v551_v21  ;;  %v741_v24 = vadd.f32 %v1201_v16, %v614_v22  ;;  %v553_v25 = vpop.f32.mrb[2].mxu0  ;;  %v616_v26 = vpop.f32.mrb[2].mxu1 }
 0x13e   :  { %v742_v27 = vadd.f32 %v721_v13, %v553_v25  ;;  %v744_v28 = vadd.f32 %v729_v14, %v616_v26  ;;  %v555_v29 = vpop.f32.mrb[3].mxu0  ;;  %v618_v30 = vpop.f32.mrb[3].mxu1 }
 0x13f   :  { %v946_v31 = vpack.c.bf16 %v739_v23, %v738_v19  ;;  %v947_v32 = vpack.c.bf16 %v741_v24, %v740_v20  ;;  %v743_v33 = vadd.f32 %v1199_v15, %v555_v29  ;;  %v745_v34 = vadd.f32 %v1201_v16, %v618_v30 }
 0x141   :  { %834 = vst [vmem:[#allocation8] sm:$0xff] %v946_v31  ;;  %835 = vst [vmem:[#allocation8 + $0x8] sm:$0xff] %v947_v32  ;;  %v948_v35 = vpack.c.bf16 %v743_v33, %v742_v27  ;;  %v949_v36 = vpack.c.bf16 %v745_v34, %v744_v28 }
 0x143   :  { %836 = vst [vmem:[#allocation8 + $0x10] sm:$0xff] %v948_v35  ;;  %837 = vst [vmem:[#allocation8 + $0x18] sm:$0xff] %v949_v36  ;;  %v559_v37 = vpop.f32.mrb[4].mxu0  ;;  %v622_v38 = vpop.f32.mrb[4].mxu1 }
 0x144   :  { %v746_v39 = vadd.f32 %v721_v13, %v559_v37  ;;  %v748_v40 = vadd.f32 %v729_v14, %v622_v38  ;;  %v561_v41 = vpop.f32.mrb[5].mxu0  ;;  %v624_v42 = vpop.f32.mrb[5].mxu1 }
 0x145   :  { %v747_v43 = vadd.f32 %v1199_v15, %v561_v41  ;;  %v749_v44 = vadd.f32 %v1201_v16, %v624_v42  ;;  %v563_v45 = vpop.f32.mrb[6].mxu0  ;;  %v626_v46 = vpop.f32.mrb[6].mxu1 }
 0x146   :  { %v750_v47 = vadd.f32 %v721_v13, %v563_v45  ;;  %v752_v48 = vadd.f32 %v729_v14, %v626_v46  ;;  %v565_v49 = vpop.f32.mrb[7].mxu0  ;;  %v628_v50 = vpop.f32.mrb[7].mxu1 }
 0x147   :  { %v950_v51 = vpack.c.bf16 %v747_v43, %v746_v39  ;;  %v951_v52 = vpack.c.bf16 %v749_v44, %v748_v40  ;;  %v751_v53 = vadd.f32 %v1199_v15, %v565_v49  ;;  %v753_v54 = vadd.f32 %v1201_v16, %v628_v50 }
 0x149   :  { %838 = vst [vmem:[#allocation8 + $0x20] sm:$0xff] %v950_v51  ;;  %839 = vst [vmem:[#allocation8 + $0x28] sm:$0xff] %v951_v52  ;;  %v952_v55 = vpack.c.bf16 %v751_v53, %v750_v47  ;;  %v953_v56 = vpack.c.bf16 %v753_v54, %v752_v48 }
 0x14b   :  { %840 = vst [vmem:[#allocation8 + $0x30] sm:$0xff] %v952_v55  ;;  %841 = vst [vmem:[#allocation8 + $0x38] sm:$0xff] %v953_v56  ;;  %v569_v57 = vpop.f32.mrb[8].mxu0  ;;  %v632_v58 = vpop.f32.mrb[8].mxu1 }
 0x14c   :  { %v754_v59 = vadd.f32 %v721_v13, %v569_v57  ;;  %v756_v60 = vadd.f32 %v729_v14, %v632_v58  ;;  %v571_v61 = vpop.f32.mrb[9].mxu0  ;;  %v634_v62 = vpop.f32.mrb[9].mxu1 }
 0x14d   :  { %v755_v63 = vadd.f32 %v1199_v15, %v571_v61  ;;  %v757_v0 = vadd.f32 %v1201_v16, %v634_v62  ;;  %v573_v1 = vpop.f32.mrb[10].mxu0  ;;  %v636_v2 = vpop.f32.mrb[10].mxu1 }
 0x14e   :  { %v758_v3 = vadd.f32 %v721_v13, %v573_v1  ;;  %v760_v4 = vadd.f32 %v729_v14, %v636_v2  ;;  %v575_v5 = vpop.f32.mrb[11].mxu0  ;;  %v638_v6 = vpop.f32.mrb[11].mxu1 }
 0x14f   :  { %v954_v7 = vpack.c.bf16 %v755_v63, %v754_v59  ;;  %v955_v8 = vpack.c.bf16 %v757_v0, %v756_v60  ;;  %v759_v9 = vadd.f32 %v1199_v15, %v575_v5  ;;  %v761_v10 = vadd.f32 %v1201_v16, %v638_v6 }
 0x151   :  { %842 = vst [vmem:[#allocation8 + $0x40] sm:$0xff] %v954_v7  ;;  %843 = vst [vmem:[#allocation8 + $0x48] sm:$0xff] %v955_v8  ;;  %v956_v11 = vpack.c.bf16 %v759_v9, %v758_v3  ;;  %v957_v12 = vpack.c.bf16 %v761_v10, %v760_v4 }
 0x153   :  { %844 = vst [vmem:[#allocation8 + $0x50] sm:$0xff] %v956_v11  ;;  %845 = vst [vmem:[#allocation8 + $0x58] sm:$0xff] %v957_v12 }
 0x154   :  { %1125 = shalt.err (!%p1122_p6)
}
 0x155   :  { %s1126_s17 = scalar_lea.hbm %s1233_s3, 1536 }
 0x156   :  { %p1127_p7 = scmp.ne.s32.totalorder %s1233_s3, %s1126_s17  ;;  %p1130_p8 = scmp.lt.u32.totalorder %s1126_s17, %s1233_s3 }
 0x158   :  { %p1132_p9 = pnand %p1130_p8, %p1127_p7 }
 0x15a   :  { %1135 = shalt.err (!%p1132_p9)
}
 0x15b   :  { %857 = dma.vmem_to_hbm [thread:$0]  %s852_s13, 1536, %s1233_s3, [#allocation5], %s1146_s0, %s1146_s0, %s1147_s9  }
 0x15c   :  { %1140 = dma.done.wait [#allocation5], 1536  }
 0x15d   :  { %1141 = vsyncadd [#allocation5], 4294965760 }
 0x15e   :  { %861 = vsyncpa [#allocation4], 1 }
 0x15f   :  { %862 = vsyncpa [#allocation7], 1 }
 0x160   :  { %863 = vsyncpa [#allocation5], 1 }

</bundles_post_ra>
